<compile_context>
chip_gen: v7x
topology: tpu7x:2x2x1
jax: 0.10.0
libtpu: 0.0.40
codegen_flags: <defaults>
</compile_context>

<pallas_src>
import functools

import jax
import jax.numpy as jnp
from jax.experimental import pallas as pl
from jax.experimental.pallas import tpu as pltpu


# ---------------------------------------------------------------------------
# Kernel 1: fused 1x1-conv value projection + spatial attention + residual
#   out1[b, qtile, h*dh:(h+1)*dh] =
#       x[b, qtile, h*dh:(h+1)*dh] + gamma * attn[b, h, qtile, :] @ v[b, :, h]
#   with v[b] = x[b] @ Wv^T computed once per batch element (q == 0).
# ---------------------------------------------------------------------------
def _spatial_kernel(gamma_ref, attn_ref, x_ref, wt_ref, o_ref, v_ref,
                    *, heads, dim_head, tq):
    # attn_ref: (1, heads, TQ, S) bf16     x_ref: (1, S, C) f32 (resident per b)
    # wt_ref:   (C, inner)        bf16     o_ref: (1, TQ, inner) f32
    # v_ref:    (S, inner)        bf16 scratch (persists across the q axis)
    q = pl.program_id(1)

    @pl.when(q == 0)
    def _():
        xb = x_ref[0].astype(jnp.bfloat16)                           # (S, C)
        v_ref[...] = jnp.dot(xb, wt_ref[...],
                             preferred_element_type=jnp.float32
                             ).astype(jnp.bfloat16)

    start = pl.multiple_of(q * tq, tq)
    x_tile = x_ref[0, pl.ds(start, tq), :]                           # (TQ, C) f32
    gamma = gamma_ref[0, 0]
    for hh in range(heads):                                          # static unroll
        sl = slice(hh * dim_head, (hh + 1) * dim_head)
        oh = jnp.dot(attn_ref[0, hh], v_ref[:, sl],
                     preferred_element_type=jnp.float32)             # (TQ, dh) f32
        # direct slice write: residual fused, no concat / merged copy
        o_ref[0, :, sl] = (x_tile[:, sl] + gamma * oh).astype(o_ref.dtype)


# ---------------------------------------------------------------------------
# Kernel 2: temporal attention + 1x1 temporal projection + residual
#   proj = sum_h (temporal_attn[b,h,qtile,:] @ out1[b,:,h*d:(h+1)*d])
#                 @ Wtp^T[h*d:(h+1)*d, :]          (head-merge folded into proj)
#   out[b, qtile] = out1[b, qtile] + temporal_gamma * proj
# ---------------------------------------------------------------------------
def _temporal_kernel(tg_ref, tattn_ref, x_ref, wtp_ref, o_ref, xb_ref,
                     *, heads, d_head, out_dim, tq):
    # tattn_ref: (1, heads, TQ, S) bf16    x_ref: (1, S, C) f32 (resident per b)
    # wtp_ref:   (C, C)            bf16    o_ref: (1, TQ, C) f32
    # xb_ref:    (S, C)            bf16 scratch (bf16 copy of out1, per b)
    q = pl.program_id(1)

    @pl.when(q == 0)
    def _():
        xb_ref[...] = x_ref[0].astype(jnp.bfloat16)

    start = pl.multiple_of(q * tq, tq)
    x_tile = x_ref[0, pl.ds(start, tq), :]                           # (TQ, C) f32
    tg = tg_ref[0, 0]
    acc = jnp.zeros((tq, out_dim), jnp.float32)
    for hh in range(heads):                                          # static unroll
        sl = slice(hh * d_head, (hh + 1) * d_head)
        th = jnp.dot(tattn_ref[0, hh], xb_ref[:, sl],
                     preferred_element_type=jnp.float32)             # (TQ, d) f32
        acc = acc + jnp.dot(th.astype(jnp.bfloat16), wtp_ref[sl, :],
                            preferred_element_type=jnp.float32)      # (TQ, C) f32
    o_ref[0] = (x_tile + tg * acc).astype(o_ref.dtype)


def _pick_query_tile(S, heads, target_bytes=2 * 1024 * 1024):
    """Largest multiple-of-16 divisor of S whose (heads, tq, S) bf16 attention
    tile stays under target_bytes (the pipeline double-buffers it)."""
    limit = max(16, target_bytes // (heads * S * 2))
    if S <= max(128, limit):
        return S
    best = None
    for tq in range(16, min(S, limit) + 1, 16):
        if S % tq == 0:
            best = tq
    # TODO(synk): if S has no suitable divisor we fall back to tq = S (no
    # q-tiling); a masked tail tile would be needed to tile such shapes.
    return best if best is not None else S


# ---------------------------------------------------------------------------
# Wrapper reproducing SpatioTemporalAggregate.forward
# ---------------------------------------------------------------------------
def spatio_temporal_aggregate(attn, temporal_attn, fmap, w_v, w_tp,
                              gamma, temporal_gamma, *, heads, dim_head):
    b, c, h, w = fmap.shape
    S = h * w
    inner = heads * dim_head
    assert inner == c, "kernel implements the dim == inner_dim (project=None) config"
    assert c % heads == 0
    d_t = c // heads                      # temporal per-head feature dim

    # ---- glue: NCHW -> token-major (b, S, c); conv weights -> (in, out) ----
    x = fmap.reshape(b, c, S).transpose(0, 2, 1)                     # (b, S, c) f32
    wt = w_v.reshape(inner, c).T.astype(jnp.bfloat16)                # (c, inner)
    gamma_s = jnp.full((1, 1), gamma, jnp.float32)

    # bf16 attention at the pallas_call boundary halves the dominant HBM reads
    attn_bf = attn.astype(jnp.bfloat16)

    tq = _pick_query_tile(S, heads)
    assert S % tq == 0
    n_q = S // tq

    spatial_cost = pl.CostEstimate(
        flops=2 * b * S * c * inner + 2 * b * heads * S * S * dim_head,
        transcendentals=0,
        bytes_accessed=(attn_bf.size * 2 + x.size * 4 + wt.size * 2
                        + b * S * inner * 4),
    )

    out1 = pl.pallas_call(
        functools.partial(_spatial_kernel, heads=heads, dim_head=dim_head, tq=tq),
        out_shape=jax.ShapeDtypeStruct((b, S, inner), fmap.dtype),
        grid_spec=pltpu.PrefetchScalarGridSpec(
            num_scalar_prefetch=0,
            grid=(b, n_q),
            in_specs=[
                pl.BlockSpec(memory_space=pltpu.MemorySpace.SMEM),        # gamma
                pl.BlockSpec((1, heads, tq, S), lambda i, q: (i, 0, q, 0)),
                pl.BlockSpec((1, S, c), lambda i, q: (i, 0, 0)),          # resident per b
                pl.BlockSpec((c, inner), lambda i, q: (0, 0)),            # constant weight
            ],
            out_specs=pl.BlockSpec((1, tq, inner), lambda i, q: (i, q, 0)),
            scratch_shapes=[pltpu.VMEM((S, inner), jnp.bfloat16)],        # v = x @ Wv^T
        ),
        compiler_params=pltpu.CompilerParams(
            dimension_semantics=("parallel", "arbitrary")),
        cost_estimate=spatial_cost,
    )(gamma_s, attn_bf, x, wt)                                       # (b, S, c) f32

    if temporal_attn is None:
        return out1.transpose(0, 2, 1).reshape(b, c, h, w)

    tattn_bf = temporal_attn.astype(jnp.bfloat16)
    wtp_t = w_tp.reshape(c, c).T.astype(jnp.bfloat16)                # (in, out)
    tgamma_s = jnp.full((1, 1), temporal_gamma, jnp.float32)

    temporal_cost = pl.CostEstimate(
        flops=2 * b * heads * S * S * d_t + 2 * b * S * c * c,
        transcendentals=0,
        bytes_accessed=(tattn_bf.size * 2 + out1.size * 4 + wtp_t.size * 2
                        + b * S * c * 4),
    )

    out2 = pl.pallas_call(
        functools.partial(_temporal_kernel, heads=heads, d_head=d_t,
                          out_dim=c, tq=tq),
        out_shape=jax.ShapeDtypeStruct((b, S, c), fmap.dtype),
        grid_spec=pltpu.PrefetchScalarGridSpec(
            num_scalar_prefetch=0,
            grid=(b, n_q),
            in_specs=[
                pl.BlockSpec(memory_space=pltpu.MemorySpace.SMEM),        # temporal_gamma
                pl.BlockSpec((1, heads, tq, S), lambda i, q: (i, 0, q, 0)),
                pl.BlockSpec((1, S, c), lambda i, q: (i, 0, 0)),          # resident per b
                pl.BlockSpec((c, c), lambda i, q: (0, 0)),                # constant weight
            ],
            out_specs=pl.BlockSpec((1, tq, c), lambda i, q: (i, q, 0)),
            scratch_shapes=[pltpu.VMEM((S, c), jnp.bfloat16)],            # bf16 out1 copy
        ),
        compiler_params=pltpu.CompilerParams(
            dimension_semantics=("parallel", "arbitrary")),
        cost_estimate=temporal_cost,
    )(tgamma_s, tattn_bf, out1, wtp_t)                               # (b, S, c) f32

    # ---- glue: back to NCHW ----
    return out2.transpose(0, 2, 1).reshape(b, c, h, w)


# ---------------------------------------------------------------------------
# Pure-JAX f32 reference (mirrors the PyTorch forward for this config)
# ---------------------------------------------------------------------------
def spatio_temporal_aggregate_ref(attn, temporal_attn, fmap, w_v, w_tp,
                                  gamma, temporal_gamma, *, heads, dim_head):
    b, c, h, w = fmap.shape
    S = h * w
    inner = heads * dim_head
    hp = jax.lax.Precision.HIGHEST
    v = jnp.einsum('oc,bchw->bohw', w_v.reshape(inner, c), fmap, precision=hp)
    v = v.reshape(b, heads, dim_head, S).transpose(0, 1, 3, 2)
    out = jnp.einsum('bhij,bhjd->bhid', attn, v, precision=hp)
    out = out.transpose(0, 1, 3, 2).reshape(b, inner, h, w)
    out = fmap + gamma * out                      # self.project is None (dim == inner)
    if temporal_attn is None:
        return out
    d = c // heads
    t = out.reshape(b, heads, d, S).transpose(0, 1, 3, 2)
    t = jnp.einsum('bhij,bhjd->bhid', temporal_attn, t, precision=hp)
    t = t.transpose(0, 1, 3, 2).reshape(b, c, h, w)
    t = jnp.einsum('oc,bchw->bohw', w_tp.reshape(c, c), t, precision=hp)
    return out + temporal_gamma * t


if __name__ == "__main__":
    # Small shapes consistent with the module: heads=2, dim_head=32 so that
    # inner_dim = 64 == dim (required by the `fmap + gamma*out` residual with
    # project=None).  Batch 4, 8x8 spatial -> S = 64.
    heads, dim_head = 2, 32
    dim = heads * dim_head            # 64 == inner_dim
    b = 4
    H = W = 8
    S = H * W

    key = jax.random.PRNGKey(0)
    k1, k2, k3, k4, k5 = jax.random.split(key, 5)
    fmap = jax.random.normal(k1, (b, dim, H, W), jnp.float32)
    attn = jax.random.normal(k2, (b, heads, S, S), jnp.float32) * 0.1
    temporal_attn = jax.random.normal(k3, (b, heads, S, S), jnp.float32) * 0.1
    # Conv2d(dim, inner_dim, 1, bias=False) and Conv2d(inner_dim, dim, 1, bias=False)
    w_v = jax.random.normal(k4, (dim, dim, 1, 1), jnp.float32) * 0.1
    w_tp = jax.random.normal(k5, (dim, dim, 1, 1), jnp.float32) * 0.1
    # The module zero-inits the gammas; use nonzero values to exercise the path.
    gamma = 0.5
    temporal_gamma = 0.25

    out = spatio_temporal_aggregate(attn, temporal_attn, fmap, w_v, w_tp,
                                    gamma, temporal_gamma,
                                    heads=heads, dim_head=dim_head)
    jax.block_until_ready(out)

    ref = spatio_temporal_aggregate_ref(attn, temporal_attn, fmap, w_v, w_tp,
                                        gamma, temporal_gamma,
                                        heads=heads, dim_head=dim_head)
    assert out.shape == fmap.shape and out.dtype == fmap.dtype
    err = jnp.max(jnp.abs(out - ref))
    # bf16 attention / value matmul inputs (f32 accumulation, f32 residual)
    # => relaxed tolerance vs the all-f32 HIGHEST-precision reference.
    assert jnp.allclose(out, ref, atol=5e-2, rtol=5e-2), f"max abs err {err}"
    print("KERNEL_OK")
</pallas_src>

<mosaic_0001>
module attributes {stable_mosaic.version = 11 : i64} {
  func.func @_spatial_kernel(%arg0: i32, %arg1: i32, %arg2: memref<1x1xf32, #tpu.memory_space<smem>>, %arg3: memref<1x2x64x64xbf16, #tpu.memory_space<vmem>>, %arg4: memref<1x64x64xf32, #tpu.memory_space<vmem>>, %arg5: memref<64x64xbf16, #tpu.memory_space<vmem>>, %arg6: memref<1x64x64xf32, #tpu.memory_space<vmem>>, %arg7: memref<64x64xbf16, #tpu.memory_space<vmem>>) attributes {dimension_semantics = [#tpu.dimension_semantics<parallel>, #tpu.dimension_semantics<arbitrary>], iteration_bounds = array<i64: 4, 1>, scalar_prefetch = 0 : i64, scratch_operands = 1 : i64, tpu.core_type = #tpu.core_type<tc>, window_params = [{transform_indices = @transform_0, window_bounds = array<i64: 1, 1>}, {transform_indices = @transform_1, window_bounds = array<i64: 1, 2, 64, 64>}, {transform_indices = @transform_2, window_bounds = array<i64: 1, 64, 64>}, {pipeline_mode = #tpu.pipeline_mode<synchronous>, transform_indices = @transform_3, window_bounds = array<i64: 64, 64>}, {transform_indices = @transform_4, window_bounds = array<i64: 1, 64, 64>}]} {
    %c0_i32 = arith.constant 0 : i32
    %0 = arith.cmpi eq, %arg1, %c0_i32 : i32
    %1 = arith.extui %0 : i1 to i32
    %c0_i32_0 = arith.constant 0 : i32
    %2 = arith.cmpi ne, %1, %c0_i32_0 : i32
    scf.if %2 {
      %c0_21 = arith.constant 0 : index
      %c0_22 = arith.constant 0 : index
      %c0_23 = arith.constant 0 : index
      %31 = vector.load %arg4[%c0_21, %c0_22, %c0_23] : memref<1x64x64xf32, #tpu.memory_space<vmem>>, vector<1x64x64xf32>
      %32 = vector.shape_cast %31 : vector<1x64x64xf32> to vector<64x64xf32>
      %33 = arith.truncf %32 : vector<64x64xf32> to vector<64x64xbf16>
      %c0_24 = arith.constant 0 : index
      %c0_25 = arith.constant 0 : index
      %34 = vector.load %arg5[%c0_24, %c0_25] : memref<64x64xbf16, #tpu.memory_space<vmem>>, vector<64x64xbf16>
      %cst_26 = arith.constant dense<0.000000e+00> : vector<64x64xf32>
      %35 = tpu.matmul %33, %34, %cst_26 {dimension_numbers = #tpu.dot_dimension_numbers<[1], [0], [0], [1], [0, 0, 1, 1], [], []>} : vector<64x64xbf16>, vector<64x64xbf16>, vector<64x64xf32> -> vector<64x64xf32>
      %36 = arith.truncf %35 : vector<64x64xf32> to vector<64x64xbf16>
      %c0_27 = arith.constant 0 : index
      %c0_28 = arith.constant 0 : index
      %37 = vector.load %arg7[%c0_27, %c0_28] : memref<64x64xbf16, #tpu.memory_space<vmem>>, vector<64x64xbf16>
      tpu.vector_store %arg7[%c0_27, %c0_28], %36 {strides = array<i32>} : memref<64x64xbf16, #tpu.memory_space<vmem>>, vector<64x64xbf16>,
    } else {
    }
    %c64_i32 = arith.constant 64 : i32
    %3 = arith.muli %arg1, %c64_i32 : i32
    %4 = tpu.assume_multiple %3, 64 : i32
    %c0 = arith.constant 0 : index
    %5 = arith.index_cast %4 : i32 to index
    %c0_1 = arith.constant 0 : index
    %6 = vector.load %arg4[%c0, %5, %c0_1] : memref<1x64x64xf32, #tpu.memory_space<vmem>>, vector<1x64x64xf32>
    %7 = vector.shape_cast %6 : vector<1x64x64xf32> to vector<64x64xf32>
    %c0_2 = arith.constant 0 : index
    %c0_3 = arith.constant 0 : index
    %8 = memref.load %arg2[%c0_2, %c0_3] : memref<1x1xf32, #tpu.memory_space<smem>>
    %c0_4 = arith.constant 0 : index
    %c0_5 = arith.constant 0 : index
    %c0_6 = arith.constant 0 : index
    %c0_7 = arith.constant 0 : index
    %9 = vector.load %arg3[%c0_4, %c0_5, %c0_6, %c0_7] : memref<1x2x64x64xbf16, #tpu.memory_space<vmem>>, vector<1x1x64x64xbf16>
    %10 = vector.shape_cast %9 : vector<1x1x64x64xbf16> to vector<64x64xbf16>
    %c0_8 = arith.constant 0 : index
    %c0_9 = arith.constant 0 : index
    %11 = vector.load %arg7[%c0_8, %c0_9] : memref<64x64xbf16, #tpu.memory_space<vmem>>, vector<64x32xbf16>
    %cst = arith.constant dense<0.000000e+00> : vector<64x32xf32>
    %12 = tpu.matmul %10, %11, %cst {dimension_numbers = #tpu.dot_dimension_numbers<[1], [0], [0], [1], [0, 0, 1, 1], [], []>} : vector<64x64xbf16>, vector<64x32xbf16>, vector<64x32xf32> -> vector<64x32xf32>
    %13 = vector.extract_strided_slice %7 {offsets = [0, 0], sizes = [64, 32], strides = [1, 1]} : vector<64x64xf32> to vector<64x32xf32>
    %14 = vector.broadcast %8 : f32 to vector<64x32xf32>
    %15 = arith.mulf %14, %12 : vector<64x32xf32>
    %16 = arith.addf %13, %15 : vector<64x32xf32>
    %c0_10 = arith.constant 0 : index
    %c0_11 = arith.constant 0 : index
    %c0_12 = arith.constant 0 : index
    %17 = vector.load %arg6[%c0_10, %c0_11, %c0_12] : memref<1x64x64xf32, #tpu.memory_space<vmem>>, vector<1x64x32xf32>
    %18 = vector.shape_cast %17 : vector<1x64x32xf32> to vector<64x32xf32>
    %19 = vector.shape_cast %16 : vector<64x32xf32> to vector<1x64x32xf32>
    tpu.vector_store %arg6[%c0_10, %c0_11, %c0_12], %19 {strides = array<i32>} : memref<1x64x64xf32, #tpu.memory_space<vmem>>, vector<1x64x32xf32>,
    %c0_13 = arith.constant 0 : index
    %c1 = arith.constant 1 : index
    %c0_14 = arith.constant 0 : index
    %c0_15 = arith.constant 0 : index
    %20 = vector.load %arg3[%c0_13, %c1, %c0_14, %c0_15] : memref<1x2x64x64xbf16, #tpu.memory_space<vmem>>, vector<1x1x64x64xbf16>
    %21 = vector.shape_cast %20 : vector<1x1x64x64xbf16> to vector<64x64xbf16>
    %c0_16 = arith.constant 0 : index
    %c32 = arith.constant 32 : index
    %22 = vector.load %arg7[%c0_16, %c32] : memref<64x64xbf16, #tpu.memory_space<vmem>>, vector<64x32xbf16>
    %cst_17 = arith.constant dense<0.000000e+00> : vector<64x32xf32>
    %23 = tpu.matmul %21, %22, %cst_17 {dimension_numbers = #tpu.dot_dimension_numbers<[1], [0], [0], [1], [0, 0, 1, 1], [], []>} : vector<64x64xbf16>, vector<64x32xbf16>, vector<64x32xf32> -> vector<64x32xf32>
    %24 = vector.extract_strided_slice %7 {offsets = [0, 32], sizes = [64, 32], strides = [1, 1]} : vector<64x64xf32> to vector<64x32xf32>
    %25 = vector.broadcast %8 : f32 to vector<64x32xf32>
    %26 = arith.mulf %25, %23 : vector<64x32xf32>
    %27 = arith.addf %24, %26 : vector<64x32xf32>
    %c0_18 = arith.constant 0 : index
    %c0_19 = arith.constant 0 : index
    %c32_20 = arith.constant 32 : index
    %28 = vector.load %arg6[%c0_18, %c0_19, %c32_20] : memref<1x64x64xf32, #tpu.memory_space<vmem>>, vector<1x64x32xf32>
    %29 = vector.shape_cast %28 : vector<1x64x32xf32> to vector<64x32xf32>
    %30 = vector.shape_cast %27 : vector<64x32xf32> to vector<1x64x32xf32>
    tpu.vector_store %arg6[%c0_18, %c0_19, %c32_20], %30 {strides = array<i32>} : memref<1x64x64xf32, #tpu.memory_space<vmem>>, vector<1x64x32xf32>,
    return
  }
  func.func @transform_0(%arg0: i32, %arg1: i32) -> (i32, i32) {
    %c0_i32 = arith.constant 0 : i32
    %c0_i32_0 = arith.constant 0 : i32
    %c0_i32_1 = arith.constant 0 : i32
    return %c0_i32, %c0_i32_0 : i32, i32
  }
  func.func @transform_1(%arg0: i32, %arg1: i32) -> (i32, i32, i32, i32) {
    %c0_i32 = arith.constant 0 : i32
    %c0_i32_0 = arith.constant 0 : i32
    %c0_i32_1 = arith.constant 0 : i32
    return %arg0, %c0_i32, %arg1, %c0_i32_0 : i32, i32, i32, i32
  }
  func.func @transform_2(%arg0: i32, %arg1: i32) -> (i32, i32, i32) {
    %c0_i32 = arith.constant 0 : i32
    %c0_i32_0 = arith.constant 0 : i32
    %c0_i32_1 = arith.constant 0 : i32
    return %arg0, %c0_i32, %c0_i32_0 : i32, i32, i32
  }
  func.func @transform_3(%arg0: i32, %arg1: i32) -> (i32, i32) {
    %c0_i32 = arith.constant 0 : i32
    %c0_i32_0 = arith.constant 0 : i32
    %c0_i32_1 = arith.constant 0 : i32
    return %c0_i32, %c0_i32_0 : i32, i32
  }
  func.func @transform_4(%arg0: i32, %arg1: i32) -> (i32, i32, i32) {
    %c0_i32 = arith.constant 0 : i32
    %c0_i32_0 = arith.constant 0 : i32
    return %arg0, %arg1, %c0_i32 : i32, i32, i32
  }
}

</mosaic_0001>

<bundles_post_ra>
// kernel: tpu_custom_call.1
= control target key start
LH: loop header
LB: loop body
LE: loop exit
PB: predicated region body
PF: predicated region fallthrough
CT: control target
= control target key end

     0   :  { %s1724_s0 = inlined_call_operand.<no memory space> [shape: f32[1,1], index: 0, kind: input, shape index: {}]   ;;  %s1725_s1 = inlined_call_operand.hbm [shape: bf16[4,2,64,64], index: 1, kind: input, shape index: {}]   ;;  %s1726_s2 = inlined_call_operand.hbm [shape: f32[4,64,64], index: 2, kind: input, shape index: {}]   ;;  %s1727_s3 = inlined_call_operand.hbm [shape: bf16[64,64], index: 3, kind: input, shape index: {}]   ;;  %s1728_s4 = inlined_call_operand.hbm [shape: f32[4,64,64], index: 4, kind: output, shape index: {}]  }
   0x1   :  { %1734 = sst [smem:[#allocation15_spill]] %s1725_s1 }
   0x2   :  { %1735 = sst [smem:[#allocation16_spill]] %s1727_s3 }
   0x3   :  { %9 = sst [smem:[#allocation3]] %s1724_s0 }
   0x4   :  { %10 = vsyncpa [#allocation5], 0 }
   0x5   :  { %12 = vsyncpa [#allocation5 + $0x1], 0 }
   0x6   :  { %13 = vsyncpa [#allocation8], 0 }
   0x7   :  { %15 = vsyncpa [#allocation8 + $0x1], 0 }
   0x8   :  { %16 = vsyncpa [#allocation6], 0 }
   0x9   :  { %18 = vsyncpa [#allocation6 + $0x1], 0  ;;  %s1347_s17 = smov 0   ;;  %s1349_s18 = smov 0  }
   0xa   :  { %s1351_s19 = smov 0   ;;  %s1353_s20 = smov 0  }
   0xb   :  { %s1355_s21 = smov 0   ;;  %s1357_s22 = smov 0  }
   0xc LB: > { %s1378_s0 = sadd.s32 4294967295, %s1305_s22   ;;  %s894_s23 = sadd.s32 4294967294, %s1305_s22   ;;  %s1305_s22 = sphi %s1357_s22, %s24_s22   ;;  %s1301_s21 = sphi %s1355_s21, %s1757_s21   ;;  %s1297_s20 = sphi %s1353_s20, %s1756_s20   ;;  %s1293_s19 = sphi %s1351_s19, %s1755_s19   ;;  %s1289_s18 = sphi %s1349_s18, %s1754_s18   ;;  %s1285_s17 = sphi %s1347_s17, %s1753_s17  }
   0xd   : > { %p79_p0 = scmp.ne.s32.totalorder %s1289_s18, %s1285_s17  ;;  %p1729_p1 = scmp.eq.s32.totalorder %s1378_s0, 0 }
   0xe   : > { %p158_p3 = scmp.eq.s32.totalorder %s894_s23, 3  ;;  %p895_p5 = scmp.ge.s32.totalorder %s1305_s22, 1 }
   0xf   : > { %p1387_p4 = por %p1729_p1, %p79_p0  ;;  %p165_p7 = scmp.lt.s32.totalorder %s1305_s22, 5 }
  0x10   : > { %p1392_p6 = por %p158_p3, %p79_p0  ;;  %s1307_s27 = smov [#allocation9]  }
  0x11   : > { %s1736_s24 = scalar_select %p1387_p4, 1, 0 }
  0x12   : > { %s1737_s25 = scalar_select %p1392_p6, 1, 0 }
  0x13   : > { %p1397_p8 = pnand %p895_p5, %p165_p7  ;;  %s180_s28 = sshll.u32 %s1307_s27, 4  ;;  %s181_s28 = int_to_ptr.vmem [resolvable:$true] %s180_s28 }
  0x14   : > { %s36_s30 = sadd.s32 1, %s1301_s21  ;;  %s1740_s3 = sld [smem:[#allocation16_spill]] }
  0x15   : > { %s1738_s26 = scalar_select %p1397_p8, 1, 0 }
  0x16   : > { %p1039_p9 = pneg %p1397_p8 }
  0x18   : > { %p1405_p10 = pnand %p1039_p9, %p1729_p1 }
  0x1a   : > { %s1127_s7 = scalar_lea.hbm %s1740_s3, 512  ;;  %p1129_p12 = pneg %p1405_p10 }
  0x1b   : > { %p1128_p11 = scmp.ne.s32.totalorder %s1740_s3, %s1127_s7  ;;  %p1134_p3 = scmp.lt.u32.totalorder %s1127_s7, %s1740_s3 }
  0x1d   : > { %p1130_p13 = pnand %p1129_p12, %p1128_p11 }
  0x1f   : > { %p1131_p0 = pneg %p1130_p13 }
  0x21   : > { %p1136_p5 = pnand %p1134_p3, %p1131_p0 }
  0x23   : > { %1139 = shalt.err (!%p1136_p5)
}
  0x24   : > { %s1140_s12 = scalar_lea.vmem %s181_s28, 512  ;;  %p1148_p2 = scmp.lt.s32.totalorder %s181_s28, %s181_s28 }
  0x25   : > { %p1141_p7 = scmp.ne.s32.totalorder %s181_s28, %s1140_s12  ;;  %p1149_p6 = scmp.lt.s32.totalorder %s1140_s12, %s1140_s12 }
  0x27   : > { %p1143_p9 = pnand %p1141_p7, %p1129_p12  ;;  %p1150_p4 = por %p1149_p6, %p1148_p2 }
  0x29   : > { %p1144_p1 = pneg %p1143_p9 }
  0x2b   : > { %p1151_p8 = pnand %p1150_p4, %p1144_p1 }
  0x2d   : > { %1154 = shalt.err (!%p1151_p8)
}
  0x2e   : > { %s1732_s13 = smov 64   ;;  %s1733_s14 = smov 4  }
  0x2f   : > { %1042 = dma.hbm_to_vmem [thread:$0]  (!%p1405_p10), %s1740_s3, 512, %s181_s28, [#allocation8], %s1732_s13, %s1732_s13, %s1733_s14  }
  0x30   : > { %p38_p1 = scmp.ge.s32.totalorder %s36_s30, 4  ;;  %s66_s23 = sadd.s32 1, %s1293_s19 }
  0x31   : > { %p73_p2 = scmp.ne.s32.totalorder %s1293_s19, %s1289_s18  ;;  %p74_p4 = scmp.eq.s32.totalorder %s1305_s22, 0 }
  0x32   : > { %s1759_s30 = smov (%p38_p1, %s36_s30), 0  ;;  %p1742_p8 = scmp.eq.s32.totalorder %s1378_s0, 3 }
  0x33   : > { %p1435_p6 = por %p74_p4, %p73_p2  ;;  %s61_s5 = ssub.s32 %s1301_s21, %s1759_s30 }
  0x34   : > { %p1441_p11 = por %p1742_p8, %p73_p2  ;;  %p1055_p12 = scmp.lt.s32.totalorder %s1305_s22, 4 }
  0x35   : > { %p64_p10 = scmp.eq.s32.totalorder %s61_s5, 0  ;;  %s194_s28 = sand.u32 1, %s1293_s19  }
  0x36   : > { %s898_s6 = sshll.u32 %s194_s28, 6  ;;  %s946_s8 = sshll.u32 %s1301_s21, 10 }
  0x37   : > { %s1450_s7 = scalar_select %p64_p10, %s1293_s19, %s66_s23  }
  0x38   : > { %s1744_s1 = sld [smem:[#allocation15_spill]]  ;;  %s198_s12 = scalar_lea.vmem [#allocation4], %s898_s6 }
  0x39   : > { %s207_s15 = sshll.u32 %s198_s12, 4  ;;  %p1462_p13 = pnand %p1055_p12, %p1435_p6  ;;  %s1458_s15 = int_to_ptr.vmem [resolvable:$true] %s207_s15 }
  0x3a   : > { %s1469_s9 = scalar_lea.hbm %s1726_s2, %s946_s8  ;;  %s221_s10 = scalar_lea.vmem [#allocation7], %s898_s6 }
  0x3b   : > { %s1471_s13 = sshll.u32 %s221_s10, 4  ;;  %s1473_s14 = scalar_lea.sflag [#allocation5], %s194_s28  ;;  %s1505_s13 = int_to_ptr.vmem [resolvable:$true] %s1471_s13 }
  0x3c   : > { %p1157_p3 = pneg %p1462_p13 }
  0x3e   : > { %s1456_s11 = scalar_lea.hbm %s1744_s1, %s946_s8  ;;  %s1160_s23 = scalar_lea.hbm %s1744_s1, 4096 }
  0x3f   : > { %s1155_s12 = scalar_lea.hbm %s1456_s11, 1024  ;;  %p1161_p9 = scmp.lt.u32.totalorder %s1456_s11, %s1744_s1 }
  0x40   : > { %p1156_p0 = scmp.ne.s32.totalorder %s1456_s11, %s1155_s12  ;;  %p1162_p1 = scmp.lt.u32.totalorder %s1160_s23, %s1155_s12 }
  0x41   : > { %p1164_p4 = scmp.lt.u32.totalorder %s1155_s12, %s1456_s11 }
  0x42   : > { %p1158_p5 = pnand %p1157_p3, %p1156_p0  ;;  %p1163_p2 = por %p1162_p1, %p1161_p9 }
  0x44   : > { %p1159_p7 = pneg %p1158_p5  ;;  %p1165_p6 = por %p1164_p4, %p1163_p2 }
  0x46   : > { %p1166_p8 = pnand %p1165_p6, %p1159_p7 }
  0x48   : > { %1169 = shalt.err (!%p1166_p8)
}
  0x49   : > { %s1170_s28 = scalar_lea.vmem %s1458_s15, 1024  ;;  %s1310_s3 = smov [#allocation4]  }
  0x4a   : > { %p1171_p12 = scmp.ne.s32.totalorder %s1458_s15, %s1170_s28  ;;  %s1175_s6 = sshll.u32 %s1310_s3, 4  ;;  %s1176_s6 = int_to_ptr.vmem [resolvable:$false] %s1175_s6 }
  0x4b   : > { %s1177_s10 = scalar_lea.vmem %s1176_s6, 2048  ;;  %p1178_p5 = scmp.lt.s32.totalorder %s1458_s15, %s1176_s6 }
  0x4c   : > { %p1173_p10 = pnand %p1171_p12, %p1157_p3  ;;  %p1179_p9 = scmp.lt.s32.totalorder %s1177_s10, %s1170_s28 }
  0x4e   : > { %p1174_p0 = pneg %p1173_p10  ;;  %p1180_p1 = por %p1179_p9, %p1178_p5 }
  0x50   : > { %p1181_p2 = pnand %p1180_p1, %p1174_p0 }
  0x52   : > { %1184 = shalt.err (!%p1181_p2)
}
  0x53   : > { %s1746_s12 = smov 4   ;;  %s1747_s27 = smov 64  }
  0x54   : > { %1046 = dma.hbm_to_vmem [thread:$0]  (!%p1462_p13), %s1456_s11, 1024, %s1458_s15, %s1473_s14, %s1747_s27, %s1747_s27, %s1746_s12  }
  0x55   : > { %s217_s23 = sand.u32 1, %s1305_s22   ;;  %s1185_s8 = scalar_lea.hbm %s1469_s9, 1024 }
  0x56   : > { %s1508_s5 = scalar_lea.sflag [#allocation8], %s217_s23  ;;  %p1186_p7 = scmp.ne.s32.totalorder %s1469_s9, %s1185_s8 }
  0x57   : > { %s1190_s6 = scalar_lea.hbm %s1726_s2, 4096  ;;  %p1191_p8 = scmp.lt.u32.totalorder %s1469_s9, %s1726_s2 }
  0x58   : > { %p1188_p4 = pnand %p1186_p7, %p1157_p3  ;;  %p1192_p12 = scmp.lt.u32.totalorder %s1190_s6, %s1185_s8 }
  0x59   : > { %p1194_p0 = scmp.lt.u32.totalorder %s1185_s8, %s1469_s9 }
  0x5a   : > { %p1189_p6 = pneg %p1188_p4  ;;  %p1193_p10 = por %p1192_p12, %p1191_p8 }
  0x5c   : > { %p1195_p5 = por %p1194_p0, %p1193_p10 }
  0x5e   : > { %p1196_p9 = pnand %p1195_p5, %p1189_p6 }
  0x60   : > { %1199 = shalt.err (!%p1196_p9)
}
  0x61   : > { %s1200_s14 = scalar_lea.vmem %s1505_s13, 1024  ;;  %s1311_s11 = smov [#allocation7]  }
  0x62   : > { %p1201_p1 = scmp.ne.s32.totalorder %s1505_s13, %s1200_s14  ;;  %s1205_s15 = sshll.u32 %s1311_s11, 4  ;;  %s1206_s15 = int_to_ptr.vmem [resolvable:$false] %s1205_s15 }
  0x63   : > { %s1207_s1 = scalar_lea.vmem %s1206_s15, 2048  ;;  %p1208_p4 = scmp.lt.s32.totalorder %s1505_s13, %s1206_s15 }
  0x64   : > { %p1203_p2 = pnand %p1201_p1, %p1157_p3  ;;  %p1209_p8 = scmp.lt.s32.totalorder %s1207_s1, %s1200_s14 }
  0x66   : > { %p1204_p7 = pneg %p1203_p2  ;;  %p1210_p12 = por %p1209_p8, %p1208_p4 }
  0x68   : > { %p1211_p10 = pnand %p1210_p12, %p1204_p7 }
  0x6a   : > { %1214 = shalt.err (!%p1211_p10)
}
  0x6b   : > { %s1312_s12 = smov 128   ;;  %s1313_s27 = smov 8  }
  0x6c   : > { %1049 = dma.hbm_to_vmem [thread:$0]  (!%p1462_p13), %s1469_s9, 1024, %s1505_s13, %s1508_s5, %s1312_s12, %s1312_s12, %s1313_s27  }
  0x6d   : > { %p1748_p3 = scmp.ne.s32.totalorder %s1738_s26, 0 }
  0x6e   : > { %s1537_s23 = sand.u32 (!%p1748_p3), 1, %s1289_s18   ;;  %p1749_p6 = scmp.ne.s32.totalorder (!%p1748_p3), %s1736_s24, 0 }
  0x6f   : > { %240 = sbr.rel (%p1748_p3) target bundleno = 858 (0x35a), region = 36  ;;  %s1540_s8 = sshll.u32 (!%p1748_p3), %s1537_s23, 6 }
  0x70   : > { %s243_s28 = scalar_lea.sflag (!%p1748_p3), [#allocation5], %s1537_s23  ;;  %s1544_s3 = scalar_lea.vmem (!%p1748_p3), [#allocation4], %s1540_s8 }
  0x76   : > { %1268 = dma.done.wait (%p1749_p6), %s243_s28, 1024  }
  0x77   : > { %1270 = vsyncadd (%p1749_p6), %s243_s28, 4294966272  ;;  %s251_s26 = sand.u32 1, %s1378_s0   ;;  %s1552_s16 = scalar_lea.vmem [#allocation7], %s1540_s8 }
  0x78   : > { %s252_s13 = scalar_lea.sflag [#allocation8], %s251_s26 }
  0x79   : > { %1272 = dma.done.wait (%p1749_p6), %s252_s13, 1024  }
  0x7a   : > { %1274 = vsyncadd (%p1749_p6), %s252_s13, 4294966272  ;;  %p1750_p13 = scmp.eq.s32.totalorder %s1378_s0, 0 }
  0x7c   : > { %1276 = dma.done.wait (%p1750_p13), [#allocation8], 512   ;;  %p1751_p0 = pmov %p1750_p13 }
  0x7d   : > { %v1115_v0 = vld [vmem:[#allocation9] sm:$0xff]   ;;  %v1116_v1 = vld [vmem:[#allocation9 + $0x8] sm:$0xff]   ;;  %v1117_v2 = vld [vmem:[#allocation9 + $0x10] sm:$0xff]   ;;  %vm340_vm0 = vcmask 523264   ;;  %s1314_s0 = smov 96   ;;  %s436_s24 = sld [smem:[#allocation3]] }
  0x7e   : > { %1278 = vsyncadd (%p1751_p0), [#allocation8], 4294966784  ;;  %973 = vmatprep.subr.bf16.mxu0 %v1115_v0  ;;  %v1563_v3 = vld [vmem:[%s1552_s16] sm:$0xff]  ;;  %v1566_v4 = vld [vmem:[%s1552_s16 + $0x8] sm:$0xff]  ;;  %vm564_vm1 = vcmask 261120   ;;  %s1621_s9 = scalar_lea.vmem [#allocation10], %s1540_s8 }
  0x7f   : > { %974 = vmatpush3.bf16.msra.mxu0 %v1115_v0  ;;  %v304_v5 = vpack.c.bf16 %v1566_v4, %v1563_v3  ;;  %v1118_v6 = vld [vmem:[#allocation9 + $0x18] sm:$0xff]   ;;  %v1572_v7 = vld [vmem:[%s1552_s16 + $0x10] sm:$0xff]  ;;  %v1578_v9 = vld [vmem:[%s1552_s16 + $0x20] sm:$0xff]  ;;  %s1315_s5 = smov 32   ;;  %vm747_vm2 = vcmask 523520   ;;  %s948_s6 = sshll.u32 %s1297_s20, 10 }
  0x80   : > { %975 = vmatprep.subr.bf16.mxu0 %v1116_v1  ;;  %v1575_v8 = vld [vmem:[%s1552_s16 + $0x18] sm:$0xff]  ;;  %v1581_v10 = vld [vmem:[%s1552_s16 + $0x28] sm:$0xff]  ;;  %v1590_v13 = vld [vmem:[%s1552_s16 + $0x30] sm:$0xff]  ;;  %s772_s10 = sshll.u32 %s1621_s9, 4  ;;  %s1669_s15 = scalar_lea.hbm %s1728_s4, %s948_s6  ;;  %s1671_s10 = int_to_ptr.vmem [resolvable:$true] %s772_s10 }
  0x81   : > { %981 = vmatprep.mubr.msk.bf16.mxu0 %vm340_vm0, %v304_v5  ;;  %v305_v11 = vpack.c.bf16 %v1575_v8, %v1572_v7  ;;  %v306_v12 = vpack.c.bf16 %v1581_v10, %v1578_v9  ;;  %v1593_v14 = vld [vmem:[%s1552_s16 + $0x38] sm:$0xff]  ;;  %v1119_v16 = vld [vmem:[%s1544_s3] sm:$0xff]   ;;  %v1120_v34 = vld [vmem:[%s1544_s3 + $0x8] sm:$0xff]   ;;  %s757_s20 = scalar_lea.sflag [#allocation6], %s1537_s23  ;;  %s1215_s1 = scalar_lea.vmem %s1671_s10, 1024 }
  0x82   : > { %v307_v15 = vpack.c.bf16 %v1593_v14, %v1590_v13  ;;  %997 = vmatprep.mubr.msk.bf16.mxu1 %vm340_vm0, %v1119_v16  ;;  %v1123_v30 = vld [vmem:[%s1544_s3 + $0x20] sm:$0xff]   ;;  %v1121_v35 = vld [vmem:[%s1544_s3 + $0x10] sm:$0xff]   ;;  %v1122_v36 = vld [vmem:[%s1544_s3 + $0x18] sm:$0xff]   ;;  %p1216_p5 = scmp.ne.s32.totalorder %s1671_s10, %s1215_s1  ;;  %s1316_s12 = smov [#allocation10]  }
  0x83   : > { %976 = vmatpush3.bf16.msra.mxu0 %v1116_v1  ;;  %v1125_v37 = vld [vmem:[%s1544_s3 + $0x30] sm:$0xff]   ;;  %v1124_v42 = vld [vmem:[%s1544_s3 + $0x28] sm:$0xff]   ;;  %v1126_v43 = vld [vmem:[%s1544_s3 + $0x38] sm:$0xff]   ;;  %v547_v44 = vstv %s436_s24  ;;  %s1219_s27 = sshll.u32 %s1316_s12, 4  ;;  %s1220_s27 = int_to_ptr.vmem [resolvable:$false] %s1219_s27 }
  0x84   : > { %977 = vmatprep.subr.bf16.mxu0 %v1117_v2  ;;  %p1217_p9 = pnand %p1216_p5, %p1441_p11  ;;  %s1221_s8 = scalar_lea.vmem %s1220_s27, 2048 }
  0x85   : > { %p1222_p2 = scmp.lt.s32.totalorder %s1671_s10, %s1220_s27  ;;  %p1223_p7 = scmp.lt.s32.totalorder %s1221_s8, %s1215_s1 }
  0x86   : > { %p1218_p1 = pneg %p1217_p9 }
  0x87   : > { %978 = vmatpush3.bf16.msra.mxu0 %v1117_v2  ;;  %p1224_p4 = por %p1223_p7, %p1222_p2 }
  0x88   : > { %979 = vmatprep.subr.bf16.mxu0 %v1118_v6 }
  0x89   : > { %p1225_p8 = pnand %p1224_p4, %p1218_p1 }
  0x8b   : > { %980 = vmatpush3.bf16.msra.mxu0 %v1118_v6 }
  0x8e   : > { %982 = vmatmul.mubr.msk.bf16.vlgmr.msra.gmra.mrb[0].mxu0 %vm340_vm0, %v305_v11 }
  0x8f   : > { %985 = vmatprep.mubr.msk.bf16.mxu0 %vm340_vm0, %v306_v12 }
  0x96   : > { %986 = vmatmul.mubr.msk.bf16.gmra.mrb[4].mxu0 %vm340_vm0, %v307_v15 }
  0x97   : > { %1013 = vmatprep.mubr.msk.bf16.mxu0 %vm340_vm0, %v1123_v30 }
 0x161   : > { %v983_v17 = vpop.f32.mrb[0].mxu0 }
 0x162   : > { %v387_v18 = vpop.f32.mrb[1].mxu0 }
 0x163   : > { %v984_v19 = vpop.f32.mrb[2].mxu0 }
 0x164   : > { %v419_v20 = vpack.c.bf16 %v984_v19, %v983_v17  ;;  %v390_v21 = vpop.f32.mrb[3].mxu0 }
 0x165   : > { %v418_v22 = vpack.c.bf16 %v390_v21, %v387_v18 }
 0x166   : > { %423 = vst.msk [vmem:[#allocation2 + $0x8] sm:$0xff] %vm340_vm0, %v419_v20 }
 0x167   : > { %422 = vst.msk [vmem:[#allocation2] sm:$0xff] %vm340_vm0, %v418_v22 }
 0x169   : > { %v987_v23 = vpop.f32.mrb[4].mxu0 }
 0x16a   : > { %v403_v24 = vpop.f32.mrb[5].mxu0 }
 0x16b   : > { %v988_v25 = vpop.f32.mrb[6].mxu0 }
 0x16c   : > { %v421_v26 = vpack.c.bf16 %v988_v25, %v987_v23  ;;  %v406_v27 = vpop.f32.mrb[7].mxu0 }
 0x16d   : > { %v420_v28 = vpack.c.bf16 %v406_v27, %v403_v24  ;;  %v446_v31 = vld [vmem:[#allocation2 + $0x8] sm:$0xff] }
 0x16e   : > { %425 = vst.msk [vmem:[#allocation2 + $0x18] sm:$0xff] %vm340_vm0, %v421_v26  ;;  %v582_v29 = vld [vmem:[#allocation2] sm:$0xff] }
 0x16f   : > { %424 = vst.msk [vmem:[#allocation2 + $0x10] sm:$0xff] %vm340_vm0, %v420_v28  ;;  %610 = vrot.lane.b32.xlu0 %v582_v29, %s1314_s0  ;;  %989 = vmatprep.subr.bf16.mxu1 %v582_v29 }
 0x170   : > { %990 = vmatpush3.bf16.msra.mxu1 %v582_v29 }
 0x171   : > { %991 = vmatprep.subr.bf16.mxu1 %v446_v31 }
 0x173   : > { %612 = vrot.lane.b32.xlu0 %v446_v31, %s1314_s0 }
 0x174   : > { %992 = vmatpush3.bf16.msra.mxu1 %v446_v31 }
 0x175   : > { %v448_v33 = vld [vmem:[#allocation2 + $0x18] sm:$0xff] }
 0x176   : > { %v584_v32 = vld [vmem:[#allocation2 + $0x10] sm:$0xff] }
 0x177   : > { %614 = vrot.lane.b32.xlu1 %v584_v32, %s1314_s0  ;;  %993 = vmatprep.subr.bf16.mxu1 %v584_v32 }
 0x178   : > { %994 = vmatpush3.bf16.msra.mxu1 %v584_v32 }
 0x179   : > { %995 = vmatprep.subr.bf16.mxu1 %v448_v33 }
 0x17b   : > { %616 = vrot.lane.b32.xlu1 %v448_v33, %s1314_s0 }
 0x17c   : > { %996 = vmatpush3.bf16.msra.mxu1 %v448_v33 }
 0x17f   : > { %998 = vmatmul.mubr.msk.bf16.vlgmr.msra.gmra.mrb[0].mxu1 %vm340_vm0, %v1120_v34 }
 0x180   : > { %1001 = vmatprep.mubr.msk.bf16.mxu1 %vm340_vm0, %v1121_v35 }
 0x187   : > { %1002 = vmatmul.mubr.msk.bf16.gmra.mrb[4].mxu1 %vm340_vm0, %v1122_v36 }
 0x188   : > { %1017 = vmatprep.mubr.msk.bf16.mxu1 %vm340_vm0, %v1125_v37 }
 0x1e1   : > { %v611_v38 = vpop.permute.xlu0 %610 }
 0x1e2   : > { %1005 = vmatprep.subr.bf16.mxu0 %v611_v38  ;;  %1021 = vmatprep.subr.bf16.mxu1 %v611_v38 }
 0x1e3   : > { %1006 = vmatpush3.bf16.msra.mxu0 %v611_v38  ;;  %1025 = vmatpush3.bf16.msra.mxu1 %v611_v38 }
 0x1e5   : > { %v613_v39 = vpop.permute.xlu0 %612 }
 0x1e6   : > { %1007 = vmatprep.subr.bf16.mxu0 %v613_v39  ;;  %1022 = vmatprep.subr.bf16.mxu1 %v613_v39 }
 0x1e7   : > { %1008 = vmatpush3.bf16.msra.mxu0 %v613_v39  ;;  %1026 = vmatpush3.bf16.msra.mxu1 %v613_v39 }
 0x1e9   : > { %v615_v40 = vpop.permute.xlu1 %614 }
 0x1ea   : > { %1009 = vmatprep.subr.bf16.mxu0 %v615_v40  ;;  %1023 = vmatprep.subr.bf16.mxu1 %v615_v40 }
 0x1eb   : > { %1010 = vmatpush3.bf16.msra.mxu0 %v615_v40  ;;  %1027 = vmatpush3.bf16.msra.mxu1 %v615_v40 }
 0x1ed   : > { %v617_v41 = vpop.permute.xlu1 %616 }
 0x1ee   : > { %1011 = vmatprep.subr.bf16.mxu0 %v617_v41  ;;  %1024 = vmatprep.subr.bf16.mxu1 %v617_v41 }
 0x1ef   : > { %1012 = vmatpush3.bf16.msra.mxu0 %v617_v41  ;;  %1028 = vmatpush3.bf16.msra.mxu1 %v617_v41 }
 0x1f2   : > { %1014 = vmatmul.mubr.msk.bf16.vlgmr.msra.gmra.mrb[8].mxu0 %vm340_vm0, %v1124_v42  ;;  %1018 = vmatmul.mubr.msk.bf16.vlgmr.msra.gmra.mrb[8].mxu1 %vm340_vm0, %v1126_v43 }
 0x252   : > { %v999_v45 = vpop.f32.mrb[0].mxu1 }
 0x253   : > { %v550_v46 = vmul.f32 %v999_v45, %v547_v44  ;;  %v516_v47 = vpop.f32.mrb[1].mxu1 }
 0x254   : > { %v548_v48 = vmul.f32 %v547_v44, %v516_v47  ;;  %v1000_v49 = vpop.f32.mrb[2].mxu1 }
 0x255   : > { %v551_v50 = vmul.f32 %v1000_v49, %v547_v44  ;;  %v519_v51 = vpop.f32.mrb[3].mxu1  ;;  %v558_v52 = vadd.f32 %v550_v46, %v1572_v7 }
 0x256   : > { %v549_v53 = vmul.f32 %v547_v44, %v519_v51  ;;  %v556_v54 = vadd.f32 %v548_v48, %v1563_v3 }
 0x257   : > { %567 = vst.msk [vmem:[%s1621_s9 + $0x10] sm:$0xff] %vm564_vm1, %v558_v52  ;;  %v559_v55 = vadd.f32 %v551_v50, %v1575_v8 }
 0x258   : > { %565 = vst.msk [vmem:[%s1621_s9] sm:$0xff] %vm564_vm1, %v556_v54  ;;  %v557_v56 = vadd.f32 %v549_v53, %v1566_v4 }
 0x259   : > { %568 = vst.msk [vmem:[%s1621_s9 + $0x18] sm:$0xff] %vm564_vm1, %v559_v55 }
 0x25a   : > { %v1003_v57 = vpop.f32.mrb[4].mxu1  ;;  %566 = vst.msk [vmem:[%s1621_s9 + $0x8] sm:$0xff] %vm564_vm1, %v557_v56 }
 0x25b   : > { %v554_v58 = vmul.f32 %v1003_v57, %v547_v44  ;;  %v532_v59 = vpop.f32.mrb[5].mxu1 }
 0x25c   : > { %v552_v60 = vmul.f32 %v547_v44, %v532_v59  ;;  %v1004_v61 = vpop.f32.mrb[6].mxu1 }
 0x25d   : > { %v555_v62 = vmul.f32 %v1004_v61, %v547_v44  ;;  %v535_v63 = vpop.f32.mrb[7].mxu1  ;;  %v562_v0 = vadd.f32 %v554_v58, %v1590_v13 }
 0x25e   : > { %v553_v1 = vmul.f32 %v547_v44, %v535_v63  ;;  %v560_v2 = vadd.f32 %v552_v60, %v1578_v9 }
 0x25f   : > { %571 = vst.msk [vmem:[%s1621_s9 + $0x30] sm:$0xff] %vm564_vm1, %v562_v0  ;;  %v563_v5 = vadd.f32 %v555_v62, %v1593_v14 }
 0x260   : > { %569 = vst.msk [vmem:[%s1621_s9 + $0x20] sm:$0xff] %vm564_vm1, %v560_v2  ;;  %v561_v6 = vadd.f32 %v553_v1, %v1581_v10 }
 0x261   : > { %572 = vst.msk [vmem:[%s1621_s9 + $0x38] sm:$0xff] %vm564_vm1, %v563_v5 }
 0x262   : > { %570 = vst.msk [vmem:[%s1621_s9 + $0x28] sm:$0xff] %vm564_vm1, %v561_v6 }
 0x2c5   : > { %v1015_v11 = vpop.f32.mrb[8].mxu0  ;;  %v1019_v12 = vpop.f32.mrb[8].mxu1 }
 0x2c6   : > { %v701_v15 = vmul.f32 %v1015_v11, %v547_v44  ;;  %v668_v16 = vpop.f32.mrb[9].mxu0  ;;  %v684_v17 = vpop.f32.mrb[9].mxu1  ;;  %v705_v27 = vmul.f32 %v1019_v12, %v547_v44 }
 0x2c7   : > { %v1016_v18 = vpop.f32.mrb[10].mxu0  ;;  %v1020_v19 = vpop.f32.mrb[10].mxu1  ;;  %v699_v23 = vmul.f32 %v668_v16, %v547_v44  ;;  %v703_v25 = vmul.f32 %v684_v17, %v547_v44 }
 0x2c8   : > { %v702_v20 = vmul.f32 %v1016_v18, %v547_v44  ;;  %719 = vrot.lane.b32.xlu0 %v701_v15, %s1315_s5  ;;  %v671_v21 = vpop.f32.mrb[11].mxu0  ;;  %v687_v22 = vpop.f32.mrb[11].mxu1  ;;  %v706_v28 = vmul.f32 %v1020_v19, %v547_v44 }
 0x2c9   : > { %v700_v24 = vmul.f32 %v671_v21, %v547_v44  ;;  %v704_v26 = vmul.f32 %v687_v22, %v547_v44 }
 0x2ca   : > { %721 = vrot.lane.b32.xlu1 %v702_v20, %s1315_s5 }
 0x2cc   : > { %715 = vrot.lane.b32.xlu0 %v699_v23, %s1315_s5 }
 0x2ce   : > { %717 = vrot.lane.b32.xlu1 %v700_v24, %s1315_s5 }
 0x2d0   : > { %723 = vrot.lane.b32.xlu0 %v703_v25, %s1315_s5 }
 0x2d2   : > { %725 = vrot.lane.b32.xlu1 %v704_v26, %s1315_s5 }
 0x2d4   : > { %727 = vrot.lane.b32.xlu0 %v705_v27, %s1315_s5 }
 0x2d6   : > { %729 = vrot.lane.b32.xlu1 %v706_v28, %s1315_s5 }
 0x33a   : > { %v720_v29 = vpop.permute.xlu0 %719 }
 0x33b   : > { %v741_v30 = vadd.f32 %v720_v29, %v1572_v7 }
 0x33c   : > { %v722_v31 = vpop.permute.xlu1 %721 }
 0x33d   : > { %750 = vst.msk [vmem:[%s1621_s9 + $0x10] sm:$0xff] %vm747_vm2, %v741_v30  ;;  %v742_v32 = vadd.f32 %v722_v31, %v1575_v8 }
 0x33e   : > { %v716_v33 = vpop.permute.xlu0 %715 }
 0x33f   : > { %751 = vst.msk [vmem:[%s1621_s9 + $0x18] sm:$0xff] %vm747_vm2, %v742_v32  ;;  %v739_v34 = vadd.f32 %v716_v33, %v1563_v3 }
 0x340   : > { %v718_v35 = vpop.permute.xlu1 %717 }
 0x341   : > { %748 = vst.msk [vmem:[%s1621_s9] sm:$0xff] %vm747_vm2, %v739_v34  ;;  %v740_v36 = vadd.f32 %v718_v35, %v1566_v4 }
 0x342   : > { %v724_v7 = vpop.permute.xlu0 %723 }
 0x343   : > { %749 = vst.msk [vmem:[%s1621_s9 + $0x8] sm:$0xff] %vm747_vm2, %v740_v36  ;;  %v743_v37 = vadd.f32 %v724_v7, %v1578_v9 }
 0x344   : > { %v726_v8 = vpop.permute.xlu1 %725 }
 0x345   : > { %752 = vst.msk [vmem:[%s1621_s9 + $0x20] sm:$0xff] %vm747_vm2, %v743_v37  ;;  %v744_v38 = vadd.f32 %v726_v8, %v1581_v10 }
 0x346   : > { %v728_v3 = vpop.permute.xlu0 %727 }
 0x347   : > { %753 = vst.msk [vmem:[%s1621_s9 + $0x28] sm:$0xff] %vm747_vm2, %v744_v38  ;;  %v745_v4 = vadd.f32 %v728_v3, %v1590_v13 }
 0x348   : > { %v730_v39 = vpop.permute.xlu1 %729 }
 0x349   : > { %754 = vst.msk [vmem:[%s1621_s9 + $0x30] sm:$0xff] %vm747_vm2, %v745_v4  ;;  %v746_v9 = vadd.f32 %v730_v39, %v1593_v14 }
 0x34b   : > { %755 = vst.msk [vmem:[%s1621_s9 + $0x38] sm:$0xff] %vm747_vm2, %v746_v9 }
 0x34c   : > { %1228 = shalt.err (!%p1225_p8)
}
 0x34d   : > { %s1229_s28 = scalar_lea.hbm %s1669_s15, 1024  ;;  %s1233_s13 = scalar_lea.hbm %s1728_s4, 4096 }
 0x34e   : > { %p1230_p12 = scmp.ne.s32.totalorder %s1669_s15, %s1229_s28  ;;  %p1234_p6 = scmp.lt.u32.totalorder %s1669_s15, %s1728_s4 }
 0x34f   : > { %p1235_p13 = scmp.lt.u32.totalorder %s1233_s13, %s1229_s28  ;;  %p1237_p5 = scmp.lt.u32.totalorder %s1229_s28, %s1669_s15 }
 0x350   : > { %p1231_p10 = pnand %p1230_p12, %p1441_p11 }
 0x351   : > { %p1236_p0 = por %p1235_p13, %p1234_p6 }
 0x352   : > { %p1232_p3 = pneg %p1231_p10 }
 0x353   : > { %p1238_p9 = por %p1237_p5, %p1236_p0 }
 0x355   : > { %p1239_p1 = pnand %p1238_p9, %p1232_p3 }
 0x357   : > { %1242 = shalt.err (!%p1239_p1)
}
 0x358   : > { %s1317_s24 = smov 128   ;;  %s1318_s9 = smov 8  }
 0x359   : > { %1037 = dma.vmem_to_hbm [thread:$0]  (%p1441_p11), %s1671_s10, 1024, %s1669_s15, %s757_s20, %s1317_s24, %s1317_s24, %s1318_s9  }
 0x35a PF: > { %p1057_p2 = scmp.ge.s32.totalorder %s1305_s22, 2  ;;  %s787_s5 = sand.u32 1, %s1285_s17  }
 0x35b   : > { %p1752_p7 = scmp.ne.s32.totalorder %s1737_s25, 0  ;;  %s788_s6 = scalar_lea.sflag [#allocation6], %s787_s5 }
 0x35d   : > { %p1051_p4 = pnand %p1057_p2, %p1752_p7 }
 0x35f   : > { %1280 = dma.done.wait (!%p1051_p4), %s788_s6, 1024  }
 0x360   : > { %1282 = vsyncadd (!%p1051_p4), %s788_s6, 4294966272  ;;  %s24_s22 = sadd.s32 1, %s1305_s22   ;;  %s1753_s17 = smov %s1289_s18 }
 0x361   : > { %p21_p8 = scmp.ge.s32.totalorder %s24_s22, 6   ;;  %s1754_s18 = smov %s1293_s19 }
 0x362   : > { %s1755_s19 = smov %s1450_s7  ;;  %s1756_s20 = smov %s1301_s21 }
 0x363   : > { %s1757_s21 = smov %s1759_s30  ;;  %23 = sbr.rel (!%p21_p8) target bundleno = 12 (0xc), region = 104 }
 0x36a   :  { %793 = vsyncpa [#allocation5], 1 }
 0x36b   :  { %795 = vsyncpa [#allocation5 + $0x1], 1 }
 0x36c   :  { %796 = vsyncpa [#allocation8], 1 }
 0x36d   :  { %798 = vsyncpa [#allocation8 + $0x1], 1 }
 0x36e   :  { %799 = vsyncpa [#allocation6], 1 }
 0x36f   :  { %801 = vsyncpa [#allocation6 + $0x1], 1 }

</bundles_post_ra>
